<compile_context>
chip_gen: v5e
topology: v5e:2x2
jax: 0.10.0
libtpu: 0.0.40
codegen_flags: <defaults>
</compile_context>

<pallas_src>
import jax
import jax.numpy as jnp
from jax.experimental import pallas as pl
from jax.experimental.pallas import tpu as pltpu

_LANE = 128      # last-dim (lane) granularity
_SUBLANE = 8     # second-to-last (sublane) granularity for f32


def _round_up(n, m):
    return ((n + m - 1) // m) * m


def _triplet_embed_kernel(x1_ref, x2_ref, x3_ref, w1_ref, b1_ref, w2_ref,
                          b2_ref, o1_ref, o2_ref, o3_ref, xs_ref):
    """Shared 2-layer MLP applied to all three branches in one call."""
    b = x1_ref.shape[0]
    bp = xs_ref.shape[0] // 3   # sublane-rounded per-branch row count

    # Stage the three branches into one VMEM slab (pure VMEM traffic, no HBM
    # concatenate in the wrapper) so the MLP runs as one tall matmul pair.
    if bp != b:                                   # keep padded rows inert
        xs_ref[...] = jnp.zeros_like(xs_ref)
    xs_ref[0 * bp:0 * bp + b, :] = x1_ref[...]
    xs_ref[1 * bp:1 * bp + b, :] = x2_ref[...]
    xs_ref[2 * bp:2 * bp + b, :] = x3_ref[...]
    xs = xs_ref[...]                                                  # [3Bp, D]

    h = jnp.dot(xs, w1_ref[...], preferred_element_type=jnp.float32)  # MXU
    h = jnp.maximum(h + b1_ref[...], 0.0)                             # bias+ReLU (VPU)
    y = jnp.dot(h, w2_ref[...], preferred_element_type=jnp.float32)   # MXU
    y = y + b2_ref[...]

    # Three exact-shape outputs -> no post-kernel HBM slice copies.
    o1_ref[...] = y[0 * bp:0 * bp + b, :].astype(o1_ref.dtype)
    o2_ref[...] = y[1 * bp:1 * bp + b, :].astype(o2_ref.dtype)
    o3_ref[...] = y[2 * bp:2 * bp + b, :].astype(o3_ref.dtype)


def _embed_kernel(x_ref, w1_ref, b1_ref, w2_ref, b2_ref, o_ref):
    """Single-branch path for get_embedding()."""
    h = jnp.dot(x_ref[...], w1_ref[...], preferred_element_type=jnp.float32)
    h = jnp.maximum(h + b1_ref[...], 0.0)
    y = jnp.dot(h, w2_ref[...], preferred_element_type=jnp.float32)
    o_ref[...] = (y + b2_ref[...]).astype(o_ref.dtype)


def prepare_params(params):
    """One-time weight prep (padding) -- done OUTSIDE the jitted forward."""
    w1, b1, w2, b2 = params
    hidden = w1.shape[1]
    h_p = _round_up(hidden, _LANE)
    w1p = jnp.pad(w1, ((0, 0), (0, h_p - hidden)))
    b1p = jnp.pad(b1.reshape(1, -1), ((0, 0), (0, h_p - hidden)))
    w2p = jnp.pad(w2, ((0, h_p - hidden), (0, 0)))
    b2p = b2.reshape(1, -1)
    return (w1p, b1p, w2p, b2p)


def _cost(n_rows, d_in, h_p, emb, n_bytes):
    flops = 2 * n_rows * (d_in * h_p + h_p * emb)
    return pl.CostEstimate(flops=flops, transcendentals=0,
                           bytes_accessed=n_bytes)


@jax.jit
def triplet_net(x1, x2, x3, padded_params):
    """Equivalent of TripletNet.forward: one fused kernel, three outputs."""
    w1p, b1p, w2p, b2p = padded_params
    b, d_in = x1.shape
    h_p = w1p.shape[1]
    emb = w2p.shape[1]
    b_p = _round_up(b, _SUBLANE)

    vmem = pl.BlockSpec(memory_space=pltpu.MemorySpace.VMEM)
    itemsize = jnp.dtype(x1.dtype).itemsize
    n_bytes = itemsize * (3 * b * d_in + 3 * b * emb) + 4 * (
        w1p.size + b1p.size + w2p.size + b2p.size)

    o1, o2, o3 = pl.pallas_call(
        _triplet_embed_kernel,
        out_shape=(jax.ShapeDtypeStruct((b, emb), x1.dtype),
                   jax.ShapeDtypeStruct((b, emb), x1.dtype),
                   jax.ShapeDtypeStruct((b, emb), x1.dtype)),
        # Gridless call: everything is VMEM-resident once (no pipelining, no
        # double-buffering of the grid-invariant weights).
        in_specs=[vmem] * 7,
        out_specs=(vmem, vmem, vmem),
        scratch_shapes=[pltpu.VMEM((3 * b_p, d_in), jnp.float32)],
        cost_estimate=_cost(3 * b_p, d_in, h_p, emb, n_bytes),
    )(x1, x2, x3, w1p, b1p, w2p, b2p)
    return o1, o2, o3


@jax.jit
def get_embedding(x, padded_params):
    """Equivalent of TripletNet.get_embedding: true single-branch path."""
    w1p, b1p, w2p, b2p = padded_params
    b, d_in = x.shape
    h_p = w1p.shape[1]
    emb = w2p.shape[1]

    vmem = pl.BlockSpec(memory_space=pltpu.MemorySpace.VMEM)
    itemsize = jnp.dtype(x.dtype).itemsize
    n_bytes = itemsize * (b * d_in + b * emb) + 4 * (
        w1p.size + b1p.size + w2p.size + b2p.size)

    return pl.pallas_call(
        _embed_kernel,
        out_shape=jax.ShapeDtypeStruct((b, emb), x.dtype),
        in_specs=[vmem] * 5,
        out_specs=vmem,
        cost_estimate=_cost(b, d_in, h_p, emb, n_bytes),
    )(x, w1p, b1p, w2p, b2p)


def init_params(key, d_in, hidden, emb, dtype=jnp.float32):
    k1, k2, k3, k4 = jax.random.split(key, 4)
    # Deterministic synthetic init (nn.Linear-style fan-in scaling).
    w1 = jax.random.normal(k1, (d_in, hidden), dtype) * (1.0 / jnp.sqrt(d_in))
    b1 = jax.random.normal(k2, (1, hidden), dtype) * 0.01
    w2 = jax.random.normal(k3, (hidden, emb), dtype) * (1.0 / jnp.sqrt(hidden))
    b2 = jax.random.normal(k4, (1, emb), dtype) * 0.01
    return (w1, b1, w2, b2)


if __name__ == "__main__":
    B, D_IN, HIDDEN, EMB = 8, 32, 64, 16

    key = jax.random.PRNGKey(0)
    kx1, kx2, kx3, kp = jax.random.split(key, 4)
    x1 = jax.random.normal(kx1, (B, D_IN), jnp.float32)
    x2 = jax.random.normal(kx2, (B, D_IN), jnp.float32)
    x3 = jax.random.normal(kx3, (B, D_IN), jnp.float32)

    raw_params = init_params(kp, D_IN, HIDDEN, EMB)
    params = jax.block_until_ready(prepare_params(raw_params))  # one-time pad

    o1, o2, o3 = jax.block_until_ready(triplet_net(x1, x2, x3, params))
    e1 = jax.block_until_ready(get_embedding(x1, params))

    # Plain-JAX reference check of the embedding-net semantics.
    def ref_embed(x):
        w1, b1, w2, b2 = raw_params
        return jnp.maximum(x @ w1 + b1, 0.0) @ w2 + b2

    for o, x in ((o1, x1), (o2, x2), (o3, x3)):
        assert o.shape == (B, EMB)
        assert jnp.allclose(o, ref_embed(x), atol=1e-4, rtol=1e-4)
    assert e1.shape == (B, EMB)
    assert jnp.allclose(e1, ref_embed(x1), atol=1e-4, rtol=1e-4)

    print("KERNEL_OK")
</pallas_src>

<mosaic_0001>
module attributes {stable_mosaic.version = 11 : i64} {
  func.func @_triplet_embed_kernel(%arg0: memref<8x32xf32, #tpu.memory_space<vmem>>, %arg1: memref<8x32xf32, #tpu.memory_space<vmem>>, %arg2: memref<8x32xf32, #tpu.memory_space<vmem>>, %arg3: memref<32x128xf32, #tpu.memory_space<vmem>>, %arg4: memref<1x128xf32, #tpu.memory_space<vmem>>, %arg5: memref<128x16xf32, #tpu.memory_space<vmem>>, %arg6: memref<1x16xf32, #tpu.memory_space<vmem>>, %arg7: memref<8x16xf32, #tpu.memory_space<vmem>>, %arg8: memref<8x16xf32, #tpu.memory_space<vmem>>, %arg9: memref<8x16xf32, #tpu.memory_space<vmem>>, %arg10: memref<24x32xf32, #tpu.memory_space<vmem>>) attributes {dimension_semantics = [], scalar_prefetch = 0 : i64, scratch_operands = 1 : i64, tpu.core_type = #tpu.core_type<tc>} {
    %c0 = arith.constant 0 : index
    %c0_0 = arith.constant 0 : index
    %0 = vector.load %arg0[%c0, %c0_0] : memref<8x32xf32, #tpu.memory_space<vmem>>, vector<8x32xf32>
    %c0_1 = arith.constant 0 : index
    %c0_2 = arith.constant 0 : index
    %1 = vector.load %arg10[%c0_1, %c0_2] : memref<24x32xf32, #tpu.memory_space<vmem>>, vector<8x32xf32>
    tpu.vector_store %arg10[%c0_1, %c0_2], %0 {strides = array<i32>} : memref<24x32xf32, #tpu.memory_space<vmem>>, vector<8x32xf32>,
    %c0_3 = arith.constant 0 : index
    %c0_4 = arith.constant 0 : index
    %2 = vector.load %arg1[%c0_3, %c0_4] : memref<8x32xf32, #tpu.memory_space<vmem>>, vector<8x32xf32>
    %c8 = arith.constant 8 : index
    %c0_5 = arith.constant 0 : index
    %3 = vector.load %arg10[%c8, %c0_5] : memref<24x32xf32, #tpu.memory_space<vmem>>, vector<8x32xf32>
    tpu.vector_store %arg10[%c8, %c0_5], %2 {strides = array<i32>} : memref<24x32xf32, #tpu.memory_space<vmem>>, vector<8x32xf32>,
    %c0_6 = arith.constant 0 : index
    %c0_7 = arith.constant 0 : index
    %4 = vector.load %arg2[%c0_6, %c0_7] : memref<8x32xf32, #tpu.memory_space<vmem>>, vector<8x32xf32>
    %c16 = arith.constant 16 : index
    %c0_8 = arith.constant 0 : index
    %5 = vector.load %arg10[%c16, %c0_8] : memref<24x32xf32, #tpu.memory_space<vmem>>, vector<8x32xf32>
    tpu.vector_store %arg10[%c16, %c0_8], %4 {strides = array<i32>} : memref<24x32xf32, #tpu.memory_space<vmem>>, vector<8x32xf32>,
    %c0_9 = arith.constant 0 : index
    %c0_10 = arith.constant 0 : index
    %6 = vector.load %arg10[%c0_9, %c0_10] : memref<24x32xf32, #tpu.memory_space<vmem>>, vector<24x32xf32>
    %c0_11 = arith.constant 0 : index
    %c0_12 = arith.constant 0 : index
    %7 = vector.load %arg3[%c0_11, %c0_12] : memref<32x128xf32, #tpu.memory_space<vmem>>, vector<32x128xf32>
    %cst = arith.constant dense<0.000000e+00> : vector<24x128xf32>
    %8 = tpu.matmul %6, %7, %cst {dimension_numbers = #tpu.dot_dimension_numbers<[1], [0], [0], [1], [0, 0, 1, 1], [], []>} : vector<24x32xf32>, vector<32x128xf32>, vector<24x128xf32> -> vector<24x128xf32>
    %c0_13 = arith.constant 0 : index
    %c0_14 = arith.constant 0 : index
    %9 = vector.load %arg4[%c0_13, %c0_14] : memref<1x128xf32, #tpu.memory_space<vmem>>, vector<1x128xf32>
    %10 = vector.broadcast %9 : vector<1x128xf32> to vector<24x128xf32>
    %11 = arith.addf %8, %10 : vector<24x128xf32>
    %cst_15 = arith.constant 0.000000e+00 : f32
    %12 = vector.broadcast %cst_15 : f32 to vector<24x128xf32>
    %13 = arith.maximumf %11, %12 : vector<24x128xf32>
    %c0_16 = arith.constant 0 : index
    %c0_17 = arith.constant 0 : index
    %14 = vector.load %arg5[%c0_16, %c0_17] : memref<128x16xf32, #tpu.memory_space<vmem>>, vector<128x16xf32>
    %cst_18 = arith.constant dense<0.000000e+00> : vector<24x16xf32>
    %15 = tpu.matmul %13, %14, %cst_18 {dimension_numbers = #tpu.dot_dimension_numbers<[1], [0], [0], [1], [0, 0, 1, 1], [], []>} : vector<24x128xf32>, vector<128x16xf32>, vector<24x16xf32> -> vector<24x16xf32>
    %c0_19 = arith.constant 0 : index
    %c0_20 = arith.constant 0 : index
    %16 = vector.load %arg6[%c0_19, %c0_20] : memref<1x16xf32, #tpu.memory_space<vmem>>, vector<1x16xf32>
    %17 = vector.broadcast %16 : vector<1x16xf32> to vector<24x16xf32>
    %18 = arith.addf %15, %17 : vector<24x16xf32>
    %19 = vector.extract_strided_slice %18 {offsets = [0, 0], sizes = [8, 16], strides = [1, 1]} : vector<24x16xf32> to vector<8x16xf32>
    %c0_21 = arith.constant 0 : index
    %c0_22 = arith.constant 0 : index
    %20 = vector.load %arg7[%c0_21, %c0_22] : memref<8x16xf32, #tpu.memory_space<vmem>>, vector<8x16xf32>
    tpu.vector_store %arg7[%c0_21, %c0_22], %19 {strides = array<i32>} : memref<8x16xf32, #tpu.memory_space<vmem>>, vector<8x16xf32>,
    %21 = vector.extract_strided_slice %18 {offsets = [8, 0], sizes = [8, 16], strides = [1, 1]} : vector<24x16xf32> to vector<8x16xf32>
    %c0_23 = arith.constant 0 : index
    %c0_24 = arith.constant 0 : index
    %22 = vector.load %arg8[%c0_23, %c0_24] : memref<8x16xf32, #tpu.memory_space<vmem>>, vector<8x16xf32>
    tpu.vector_store %arg8[%c0_23, %c0_24], %21 {strides = array<i32>} : memref<8x16xf32, #tpu.memory_space<vmem>>, vector<8x16xf32>,
    %23 = vector.extract_strided_slice %18 {offsets = [16, 0], sizes = [8, 16], strides = [1, 1]} : vector<24x16xf32> to vector<8x16xf32>
    %c0_25 = arith.constant 0 : index
    %c0_26 = arith.constant 0 : index
    %24 = vector.load %arg9[%c0_25, %c0_26] : memref<8x16xf32, #tpu.memory_space<vmem>>, vector<8x16xf32>
    tpu.vector_store %arg9[%c0_25, %c0_26], %23 {strides = array<i32>} : memref<8x16xf32, #tpu.memory_space<vmem>>, vector<8x16xf32>,
    return
  }
}

</mosaic_0001>

<bundles_post_ra>
// kernel: triplet_net.1
= control target key start
LH: loop header
LB: loop body
LE: loop exit
PB: predicated region body
PF: predicated region fallthrough
CT: control target
= control target key end

     0   :  { %15 = vsyncpa [#allocation4], 0  ;;  %vm32_vm0 = vcmask 261120   ;;  %s446_s0 = inlined_call_operand.vmem [shape: f32[8,32], index: 0, kind: input, shape index: {}]   ;;  %s447_s1 = inlined_call_operand.vmem [shape: f32[8,32], index: 1, kind: input, shape index: {}]   ;;  %s448_s2 = inlined_call_operand.vmem [shape: f32[8,32], index: 2, kind: input, shape index: {}]   ;;  %s449_s3 = inlined_call_operand.vmem [shape: f32[32,128], index: 3, kind: input, shape index: {}]   ;;  %s450_s4 = inlined_call_operand.vmem [shape: f32[1,128], index: 4, kind: input, shape index: {}]   ;;  %s451_s5 = inlined_call_operand.vmem [shape: f32[128,16], index: 5, kind: input, shape index: {}]   ;;  %s452_s6 = inlined_call_operand.vmem [shape: f32[1,16], index: 6, kind: input, shape index: {}]   ;;  %s453_s7 = inlined_call_operand.hbm [shape: f32[8,16], index: 7, kind: output, shape index: {0}]   ;;  %s454_s8 = inlined_call_operand.hbm [shape: f32[8,16], index: 8, kind: output, shape index: {1}]   ;;  %s455_s9 = inlined_call_operand.hbm [shape: f32[8,16], index: 9, kind: output, shape index: {2}]  }
   0x1   :  { %v44_v0 = vld [vmem:[%s449_s3 + $0x18] sm:$0xff]  ;;  %v43_v1 = vld [vmem:[%s449_s3 + $0x10] sm:$0xff]  ;;  %v42_v2 = vld [vmem:[%s449_s3 + $0x8] sm:$0xff] }
   0x2   :  { %70 = vmatpush.msra.mxu0 %v44_v0  ;;  %v31_v3 = vld [vmem:[%s446_s0] sm:$0xff]  ;;  %v102_v6 = vld [vmem:[%s451_s5 + $0x78] sm:$0xff]  ;;  %v101_v7 = vld [vmem:[%s451_s5 + $0x70] sm:$0xff] }
   0x3   :  { %v34_v4 = vld [vmem:[%s447_s1] sm:$0xff]  ;;  %33 = vst.msk [vmem:[#allocation2] sm:$0xff] %vm32_vm0, %v31_v3  ;;  %107 = vmatpush.msra.mxu1 %v102_v6  ;;  %v100_v9 = vld [vmem:[%s451_s5 + $0x68] sm:$0xff]  ;;  %187 = vmatpush.msra.mxu2 %v102_v6 }
   0x4   :  { %v36_v5 = vld [vmem:[%s448_s2] sm:$0xff]  ;;  %71 = vmatpush.msra.mxu0 %v43_v1  ;;  %35 = vst.msk [vmem:[#allocation2 + $0x8] sm:$0xff] %vm32_vm0, %v34_v4  ;;  %188 = vmatpush.msra.mxu3 %v102_v6 }
   0x5   :  { %v41_v8 = vld [vmem:[%s449_s3] sm:$0xff]  ;;  %37 = vst.msk [vmem:[#allocation2 + $0x10] sm:$0xff] %vm32_vm0, %v36_v5  ;;  %108 = vmatpush.msra.mxu1 %v101_v7  ;;  %189 = vmatpush.msra.mxu2 %v101_v7 }
   0x6   :  { %72 = vmatpush.msra.mxu0 %v42_v2  ;;  %v99_v10 = vld [vmem:[%s451_s5 + $0x60] sm:$0xff]  ;;  %190 = vmatpush.msra.mxu3 %v101_v7 }
   0x7   :  { %109 = vmatpush.msra.mxu1 %v100_v9 }
   0x8   :  { %73 = vmatpush.msra.mxu0 %v41_v8 }
   0x9   :  { %16 = vsyncpa [#allocation6], 0  ;;  %v98_v11 = vld [vmem:[%s451_s5 + $0x58] sm:$0xff]  ;;  %191 = vmatpush.msra.mxu2 %v100_v9  ;;  %192 = vmatpush.msra.mxu3 %v100_v9  ;;  %v97_v13 = vld [vmem:[%s451_s5 + $0x50] sm:$0xff]  ;;  %s300_s29 = smov [#allocation3]   ;;  %s144_s11 = sshll.u32 %s453_s7, 4  ;;  %s145_s11 = int_to_ptr.hbm [resolvable:$true] %s144_s11 }
   0xa   :  { %v38_v12 = vld [vmem:[#allocation2] sm:$0xff]  ;;  %110 = vmatpush.msra.mxu1 %v99_v10  ;;  %v96_v14 = vld [vmem:[%s451_s5 + $0x48] sm:$0xff]  ;;  %v94_v17 = vld [vmem:[%s451_s5 + $0x38] sm:$0xff]  ;;  %s142_s30 = sshll.u32 %s300_s29, 4  ;;  %vm133_vm1 = vcmask 130048   ;;  %s301_s12 = smov [#allocation5]   ;;  %s143_s30 = int_to_ptr.vmem [resolvable:$true] %s142_s30 }
   0xb   :  { %184 = vmatmul.msk.f32.vlgmr.msra.gmra.mxu0 %vm32_vm0, %v38_v12  ;;  %193 = vmatpush.msra.mxu2 %v99_v10  ;;  %v95_v15 = vld [vmem:[%s451_s5 + $0x40] sm:$0xff]  ;;  %v39_v16 = vld [vmem:[#allocation2 + $0x8] sm:$0xff]  ;;  %v93_v18 = vld [vmem:[%s451_s5 + $0x30] sm:$0xff]  ;;  %s153_s13 = sshll.u32 %s301_s12, 4  ;;  %s302_s7 = smov [#allocation7]   ;;  %s154_s13 = int_to_ptr.vmem [resolvable:$true] %s153_s13 }
   0xc   :  { %111 = vmatpush.msra.mxu1 %v98_v11  ;;  %194 = vmatpush.msra.mxu3 %v99_v10  ;;  %v92_v19 = vld [vmem:[%s451_s5 + $0x28] sm:$0xff]  ;;  %v91_v20 = vld [vmem:[%s451_s5 + $0x20] sm:$0xff]  ;;  %v40_v21 = vld [vmem:[#allocation2 + $0x10] sm:$0xff]  ;;  %s164_s16 = sshll.u32 %s302_s7, 4  ;;  %s166_s19 = sshll.u32 %s455_s9, 4  ;;  %s165_s16 = int_to_ptr.vmem [resolvable:$true] %s164_s16  ;;  %s167_s19 = int_to_ptr.hbm [resolvable:$true] %s166_s19 }
   0xd   :  { %195 = vmatpush.msra.mxu2 %v98_v11  ;;  %v90_v22 = vld [vmem:[%s451_s5 + $0x18] sm:$0xff]  ;;  %v89_v23 = vld [vmem:[%s451_s5 + $0x10] sm:$0xff]  ;;  %v88_v24 = vld [vmem:[%s451_s5 + $0x8] sm:$0xff] }
   0xe   :  { %112 = vmatpush.msra.mxu1 %v97_v13  ;;  %196 = vmatpush.msra.mxu3 %v98_v11  ;;  %v87_v25 = vld [vmem:[%s451_s5] sm:$0xff] }
   0xf   :  { %197 = vmatpush.msra.mxu2 %v97_v13  ;;  %v222_v26 = vld [vmem:[%s450_s4] ss:$0 sm:$0xff] }
  0x10   :  { %113 = vmatpush.msra.mxu1 %v96_v14  ;;  %198 = vmatpush.msra.mxu3 %v97_v13  ;;  %v223_v36 = vld [vmem:[%s452_s6] ss:$0 sm:$0xff]  ;;  %s155_s6 = sshll.u32 %s454_s8, 4  ;;  %s156_s6 = int_to_ptr.hbm [resolvable:$true] %s155_s6 }
  0x11   :  { %199 = vmatpush.msra.mxu2 %v96_v14 }
  0x12   :  { %114 = vmatpush.msra.mxu1 %v95_v15  ;;  %200 = vmatpush.msra.mxu3 %v96_v14 }
  0x13   :  { %185 = vmatmul.msk.f32.gmra.mxu0 %vm32_vm0, %v39_v16  ;;  %201 = vmatpush.msra.mxu2 %v95_v15 }
  0x14   :  { %115 = vmatpush.msra.mxu1 %v94_v17  ;;  %202 = vmatpush.msra.mxu3 %v95_v15 }
  0x15   :  { %203 = vmatpush.msra.mxu2 %v94_v17 }
  0x16   :  { %116 = vmatpush.msra.mxu1 %v93_v18  ;;  %204 = vmatpush.msra.mxu3 %v94_v17 }
  0x17   :  { %205 = vmatpush.msra.mxu2 %v93_v18 }
  0x18   :  { %117 = vmatpush.msra.mxu1 %v92_v19  ;;  %206 = vmatpush.msra.mxu3 %v93_v18 }
  0x19   :  { %207 = vmatpush.msra.mxu2 %v92_v19 }
  0x1a   :  { %118 = vmatpush.msra.mxu1 %v91_v20  ;;  %208 = vmatpush.msra.mxu3 %v92_v19 }
  0x1b   :  { %186 = vmatmul.msk.f32.gmra.mxu0 %vm32_vm0, %v40_v21  ;;  %209 = vmatpush.msra.mxu2 %v91_v20 }
  0x1c   :  { %119 = vmatpush.msra.mxu1 %v90_v22  ;;  %210 = vmatpush.msra.mxu3 %v91_v20 }
  0x1d   :  { %211 = vmatpush.msra.mxu2 %v90_v22 }
  0x1e   :  { %212 = vmatpush.msra.mxu3 %v90_v22  ;;  %120 = vmatpush.msra.mxu1 %v89_v23 }
  0x1f   :  { %213 = vmatpush.msra.mxu2 %v89_v23 }
  0x20   :  { %214 = vmatpush.msra.mxu3 %v89_v23  ;;  %121 = vmatpush.msra.mxu1 %v88_v24 }
  0x21   :  { %215 = vmatpush.msra.mxu2 %v88_v24 }
  0x22   :  { %216 = vmatpush.msra.mxu3 %v88_v24  ;;  %122 = vmatpush.msra.mxu1 %v87_v25 }
  0x23   :  { %217 = vmatpush.msra.mxu2 %v87_v25 }
  0x24   :  { %218 = vmatpush.msra.mxu3 %v87_v25 }
  0x88   :  { %v75_v27 = vpop.f32.mrf.mxu0 }
  0x89   :  { %v76_v28 = vadd.f32 %v222_v26, %v75_v27 }
  0x8b   :  { %v84_v29 = vmax.f32 %v76_v28, 0.0 }
  0x8d   :  { %123 = vmatmul.f32.vlgmr.msra.gmra.mxu1 %v84_v29 }
  0x90   :  { %v78_v30 = vpop.f32.mrf.mxu0 }
  0x91   :  { %v79_v31 = vadd.f32 %v222_v26, %v78_v30 }
  0x93   :  { %v85_v32 = vmax.f32 %v79_v31, 0.0 }
  0x95   :  { %126 = vmatmul.f32.vlgmr.msra.gmra.mxu2 %v85_v32 }
  0x98   :  { %v81_v33 = vpop.f32.mrf.mxu0 }
  0x99   :  { %v82_v34 = vadd.f32 %v222_v26, %v81_v33 }
  0x9b   :  { %v86_v35 = vmax.f32 %v82_v34, 0.0 }
  0x9d   :  { %129 = vmatmul.f32.vlgmr.msra.gmra.mxu3 %v86_v35 }
 0x10a   :  { %v124_v37 = vpop.f32.mrf.mxu1 }
 0x10b   :  { %v125_v38 = vadd.f32 %v223_v36, %v124_v37 }
 0x10d   :  { %134 = vst.msk [vmem:[#allocation3] sm:$0xff] %vm133_vm1, %v125_v38 }
 0x10e   :  { %147 = dma.vmem_to_hbm [thread:$0]  %s143_s30, 128, %s145_s11, [#allocation4]  }
 0x118   :  { %v127_v39 = vpop.f32.mrf.mxu2 }
 0x119   :  { %v128_v40 = vadd.f32 %v223_v36, %v127_v39 }
 0x11b   :  { %135 = vst.msk [vmem:[#allocation5] sm:$0xff] %vm133_vm1, %v128_v40 }
 0x11c   :  { %158 = dma.vmem_to_hbm [thread:$0]  %s154_s13, 128, %s156_s6, [#allocation6]  }
 0x120   :  { %v130_v41 = vpop.f32.mrf.mxu3 }
 0x121   :  { %v131_v42 = vadd.f32 %v223_v36, %v130_v41 }
 0x123   :  { %136 = vst.msk [vmem:[#allocation7] sm:$0xff] %vm133_vm1, %v131_v42 }
 0x124   :  { %169 = dma.vmem_to_hbm [thread:$0]  %s165_s16, 128, %s167_s19, [#allocation6]  }
 0x125   :  { %296 = dma.done.wait [#allocation4], 128  }
 0x126   :  { %297 = vsyncadd [#allocation4], 4294967168 }
 0x127   :  { %298 = dma.done.wait [#allocation6], 256  }
 0x128   :  { %299 = vsyncadd [#allocation6], 4294967040 }
 0x129   :  { %182 = vsyncpa [#allocation4], 1 }
 0x12a   :  { %183 = vsyncpa [#allocation6], 1 }

</bundles_post_ra>
